<compile_context>
chip_gen: v7x
topology: tpu7x:2x2x1
jax: 0.10.0
libtpu: 0.0.40
codegen_flags: <defaults>
</compile_context>

<pallas_src>
import functools

import jax
import jax.numpy as jnp
from jax import lax
from jax.experimental import pallas as pl
from jax.experimental.pallas import tpu as pltpu

_TARGET_BLOCK_B = 512  # preferred lane width per grid step (sweepable)


def _crf_fwd_kernel(unary_ref, trans_ref, out_ref, *, start_idx, end_idx,
                    seq_len, n_tags):
    b_block = out_ref.shape[-1]
    trans = trans_ref[...]                      # (N, N) f32, [to, from]
    # Hoisted: E[i, j] = exp(trans[i, j]).  Built once per grid step.
    exp_trans = jnp.exp(trans)                  # (N, N)
    # Terminal row exp(trans[end_idx, :]) as a (N, 1) column for the final LSE.
    e_end = exp_trans[end_idx, :].reshape(n_tags, 1)

    # init alphas: (N, B) filled with -1000.0, start row set to 0.0
    row = lax.broadcasted_iota(jnp.int32, (n_tags, b_block), 0)
    alphas = jnp.where(row == start_idx, 0.0, -1000.0).astype(jnp.float32)

    def step(t, alphas):
        emit = unary_ref[t]                                  # (N, B) emissions
        # LSE_j(alphas[j,b] + trans[i,j]) = m[b] + log(sum_j E[i,j]*exp(alphas[j,b]-m[b]))
        m = jnp.max(alphas, axis=0, keepdims=True)           # (1, B)  XLU
        p = jnp.exp(alphas - m)                              # (N, B)  EUP
        q = jnp.dot(exp_trans, p,
                    preferred_element_type=jnp.float32,
                    precision=jax.lax.Precision.HIGHEST)     # (N, B)  MXU, f32
        # emission is independent of the previous tag -> added after the LSE
        return emit + m + jnp.log(q)                         # (N, B) new carry

    if seq_len <= 16:
        # Short static sequence: fully unroll (T = 8 here).
        for t in range(seq_len):
            alphas = step(t, alphas)
    else:
        # Longer sequences: bound live ranges / code size with a real loop.
        alphas = lax.fori_loop(0, seq_len, step, alphas, unroll=4)

    # terminal_var[j, b] = alphas[j, b] + transitions[end_idx, j]; LSE over j.
    m = jnp.max(alphas, axis=0, keepdims=True)               # (1, B)
    p = jnp.exp(alphas - m)                                  # (N, B)
    out_ref[...] = m + jnp.log(jnp.sum(e_end * p, axis=0, keepdims=True))


def _pick_block_b(batch, target=_TARGET_BLOCK_B):
    """Lane width per grid step: as wide as `target`, but keep >= 2 grid
    blocks whenever the batch needs more than one 128-lane vreg (v7x: 2 TCs)."""
    half = pl.cdiv(pl.cdiv(batch, 2), 128) * 128
    return max(128, min(target, half))


def crf_forward_batch(unary_btn, transitions, start_idx, end_idx,
                      *, block_b=None):
    """Batched Pallas CRF forward.

    unary_btn: (B, T, N) emissions (already prepped with <GO>/<EOS> columns).
    transitions: (N, N) with transitions[to_tag, from_tag].
    Returns: (B,) log-partition per sequence.
    """
    B, T, N = unary_btn.shape
    assert transitions.shape == (N, N)
    if block_b is None:
        block_b = _pick_block_b(B)
    b_pad = pl.cdiv(B, block_b) * block_b

    # (T, N, B): tags on sublanes, batch on lanes.
    # TODO(synk): in production, have the producer emit (T, N, B) directly (and
    # size B to the block) so this transpose/pad HBM round trip disappears.
    u = jnp.transpose(unary_btn.astype(jnp.float32), (1, 2, 0))
    if b_pad != B:
        u = jnp.pad(u, ((0, 0), (0, 0), (0, b_pad - B)))  # padded lanes sliced off

    kernel = functools.partial(
        _crf_fwd_kernel,
        start_idx=int(start_idx),
        end_idx=int(end_idx),
        seq_len=int(T),
        n_tags=int(N),
    )
    out = pl.pallas_call(
        kernel,
        out_shape=jax.ShapeDtypeStruct((1, b_pad), jnp.float32),
        grid=(b_pad // block_b,),
        in_specs=[
            pl.BlockSpec((T, N, block_b), lambda b: (0, 0, b)),   # unary
            pl.BlockSpec((N, N), lambda b: (0, 0)),               # transitions
        ],
        out_specs=pl.BlockSpec((1, block_b), lambda b: (0, b)),   # lane-dense
        compiler_params=pltpu.CompilerParams(
            dimension_semantics=("parallel",)),                    # v7x: 2 TCs
    )(u, transitions.astype(jnp.float32))
    return out[0, :B]


def crf_forward(unary_tn, transitions, start_idx, end_idx):
    """Single-sequence CRF forward (original module semantics): scalar alpha."""
    return crf_forward_batch(unary_tn[None], transitions, start_idx, end_idx)[0]


# ----- plain-JAX glue mirroring CRF.__init__ / CRF._prep_input ---------------

def prep_input(unary):
    """CRF._prep_input: append two -1000.0 columns for <GO>/<EOS> emissions."""
    ends = jnp.full(unary.shape[:-1] + (2,), -1000.0, dtype=unary.dtype)
    return jnp.concatenate([unary, ends], axis=-1)


def crf_forward_ref(unary, trans, start_idx, end_idx):
    """Pure-JAX single-sequence reference reproducing the torch loop exactly."""
    n = trans.shape[0]
    alphas = jnp.full((1, n), -1000.0, jnp.float32).at[0, start_idx].set(0.0)
    for t in range(unary.shape[0]):
        ntv = alphas + unary[t][:, None] + trans
        m = jnp.max(ntv, axis=1, keepdims=True)
        alphas = jnp.transpose(
            m + jnp.log(jnp.sum(jnp.exp(ntv - m), axis=1, keepdims=True)))
    terminal = alphas + trans[end_idx]
    m = jnp.max(terminal)
    return m + jnp.log(jnp.sum(jnp.exp(terminal - m)))


if __name__ == "__main__":
    # Module config: CRF(n_tags=6, idxs=None) -> adds <GO>/<EOS>,
    # so self.n_tags = 8, start_idx = 6, end_idx = 7.
    n_out_tags = 6
    n_tags = n_out_tags + 2
    start_idx, end_idx = n_out_tags, n_out_tags + 1
    seq_len = 8
    batch = 200  # adaptive block_b -> 128-lane blocks, grid of 2 (both v7x TCs)

    key = jax.random.PRNGKey(0)
    k_u, k_t = jax.random.split(key)
    unary_raw = jax.random.normal(k_u, (batch, seq_len, n_out_tags), jnp.float32)
    # transitions_p is (n_tags, n_tags); torch inits it to zero — use small
    # deterministic values instead so the kernel path is non-trivial.
    transitions = 0.1 * jax.random.normal(k_t, (n_tags, n_tags), jnp.float32)
    # TODO(synk): transition mask (crf_mask / masked_fill) not built here since
    # vocab=None in the default config; it would be plain-JAX glue on `transitions`.

    unary = prep_input(unary_raw)  # (batch, 8, 8): layout (B, T, N)

    # Batched kernel path.
    alphas = crf_forward_batch(unary, transitions, start_idx, end_idx)
    alphas = jax.block_until_ready(alphas)
    assert alphas.shape == (batch,)

    # Reference (per-sequence torch-equivalent loop, vmapped over batch).
    alphas_ref = jax.vmap(crf_forward_ref, in_axes=(0, None, None, None))(
        unary, transitions, start_idx, end_idx)
    assert jnp.allclose(alphas, alphas_ref, atol=2e-4, rtol=2e-4), (
        alphas[:4], alphas_ref[:4])

    # Single-sequence path (exact original module semantics).
    a0 = crf_forward(unary[0], transitions, start_idx, end_idx)
    a0 = jax.block_until_ready(a0)
    assert jnp.allclose(a0, alphas_ref[0], atol=2e-4, rtol=2e-4), (a0, alphas_ref[0])

    print("KERNEL_OK")
</pallas_src>

<mosaic_0001>
module attributes {stable_mosaic.version = 11 : i64} {
  func.func @_crf_fwd_kernel(%arg0: i32, %arg1: memref<8x8x128xf32, #tpu.memory_space<vmem>>, %arg2: memref<8x8xf32, #tpu.memory_space<vmem>>, %arg3: memref<1x128xf32, #tpu.memory_space<vmem>>) attributes {dimension_semantics = [#tpu.dimension_semantics<parallel>], iteration_bounds = array<i64: 2>, scalar_prefetch = 0 : i64, scratch_operands = 0 : i64, tpu.core_type = #tpu.core_type<tc>, window_params = [{transform_indices = @transform_0, window_bounds = array<i64: 8, 8, 128>}, {pipeline_mode = #tpu.pipeline_mode<synchronous>, transform_indices = @transform_1, window_bounds = array<i64: 8, 8>}, {transform_indices = @transform_2, window_bounds = array<i64: 1, 128>}]} {
    %c0 = arith.constant 0 : index
    %c0_0 = arith.constant 0 : index
    %0 = vector.load %arg2[%c0, %c0_0] : memref<8x8xf32, #tpu.memory_space<vmem>>, vector<8x8xf32>
    %1 = math.exp %0 : vector<8x8xf32>
    %2 = vector.extract_strided_slice %1 {offsets = [7, 0], sizes = [1, 8], strides = [1, 1]} : vector<8x8xf32> to vector<1x8xf32>
    %3 = vector.shape_cast %2 : vector<1x8xf32> to vector<8xf32>
    %4 = vector.shape_cast %3 : vector<8xf32> to vector<8x1xf32>
    %5 = tpu.iota {dimensions = array<i32: 0>} : vector<8x128xi32>
    %c6_i32 = arith.constant 6 : i32
    %6 = vector.broadcast %c6_i32 : i32 to vector<8x128xi32>
    %7 = arith.cmpi eq, %5, %6 : vector<8x128xi32>
    %cst = arith.constant 0.000000e+00 : f32
    %cst_1 = arith.constant -1.000000e+03 : f32
    %8 = vector.broadcast %cst : f32 to vector<8x128xf32>
    %9 = vector.broadcast %cst_1 : f32 to vector<8x128xf32>
    %10 = arith.select %7, %8, %9 : vector<8x128xi1>, vector<8x128xf32>
    %c0_2 = arith.constant 0 : index
    %c0_3 = arith.constant 0 : index
    %c0_4 = arith.constant 0 : index
    %11 = vector.load %arg1[%c0_2, %c0_3, %c0_4] : memref<8x8x128xf32, #tpu.memory_space<vmem>>, vector<1x8x128xf32>
    %12 = vector.shape_cast %11 : vector<1x8x128xf32> to vector<8x128xf32>
    %cst_5 = arith.constant dense<0xFF800000> : vector<128xf32>
    %13 = vector.multi_reduction <maximumf>, %10, %cst_5 [0] : vector<8x128xf32> to vector<128xf32>
    %14 = vector.shape_cast %13 : vector<128xf32> to vector<1x128xf32>
    %15 = vector.broadcast %14 : vector<1x128xf32> to vector<8x128xf32>
    %16 = arith.subf %10, %15 : vector<8x128xf32>
    %17 = math.exp %16 : vector<8x128xf32>
    %cst_6 = arith.constant dense<0.000000e+00> : vector<8x128xf32>
    %18 = tpu.matmul %1, %17, %cst_6 {dimension_numbers = #tpu.dot_dimension_numbers<[1], [0], [0], [1], [0, 0, 1, 1], [], []>, precision = #tpu.contract_precision<fp32>} : vector<8x8xf32>, vector<8x128xf32>, vector<8x128xf32> -> vector<8x128xf32>
    %19 = vector.broadcast %14 : vector<1x128xf32> to vector<8x128xf32>
    %20 = arith.addf %12, %19 : vector<8x128xf32>
    %21 = math.log %18 : vector<8x128xf32>
    %22 = arith.addf %20, %21 : vector<8x128xf32>
    %c1 = arith.constant 1 : index
    %c0_7 = arith.constant 0 : index
    %c0_8 = arith.constant 0 : index
    %23 = vector.load %arg1[%c1, %c0_7, %c0_8] : memref<8x8x128xf32, #tpu.memory_space<vmem>>, vector<1x8x128xf32>
    %24 = vector.shape_cast %23 : vector<1x8x128xf32> to vector<8x128xf32>
    %cst_9 = arith.constant dense<0xFF800000> : vector<128xf32>
    %25 = vector.multi_reduction <maximumf>, %22, %cst_9 [0] : vector<8x128xf32> to vector<128xf32>
    %26 = vector.shape_cast %25 : vector<128xf32> to vector<1x128xf32>
    %27 = vector.broadcast %26 : vector<1x128xf32> to vector<8x128xf32>
    %28 = arith.subf %22, %27 : vector<8x128xf32>
    %29 = math.exp %28 : vector<8x128xf32>
    %cst_10 = arith.constant dense<0.000000e+00> : vector<8x128xf32>
    %30 = tpu.matmul %1, %29, %cst_10 {dimension_numbers = #tpu.dot_dimension_numbers<[1], [0], [0], [1], [0, 0, 1, 1], [], []>, precision = #tpu.contract_precision<fp32>} : vector<8x8xf32>, vector<8x128xf32>, vector<8x128xf32> -> vector<8x128xf32>
    %31 = vector.broadcast %26 : vector<1x128xf32> to vector<8x128xf32>
    %32 = arith.addf %24, %31 : vector<8x128xf32>
    %33 = math.log %30 : vector<8x128xf32>
    %34 = arith.addf %32, %33 : vector<8x128xf32>
    %c2 = arith.constant 2 : index
    %c0_11 = arith.constant 0 : index
    %c0_12 = arith.constant 0 : index
    %35 = vector.load %arg1[%c2, %c0_11, %c0_12] : memref<8x8x128xf32, #tpu.memory_space<vmem>>, vector<1x8x128xf32>
    %36 = vector.shape_cast %35 : vector<1x8x128xf32> to vector<8x128xf32>
    %cst_13 = arith.constant dense<0xFF800000> : vector<128xf32>
    %37 = vector.multi_reduction <maximumf>, %34, %cst_13 [0] : vector<8x128xf32> to vector<128xf32>
    %38 = vector.shape_cast %37 : vector<128xf32> to vector<1x128xf32>
    %39 = vector.broadcast %38 : vector<1x128xf32> to vector<8x128xf32>
    %40 = arith.subf %34, %39 : vector<8x128xf32>
    %41 = math.exp %40 : vector<8x128xf32>
    %cst_14 = arith.constant dense<0.000000e+00> : vector<8x128xf32>
    %42 = tpu.matmul %1, %41, %cst_14 {dimension_numbers = #tpu.dot_dimension_numbers<[1], [0], [0], [1], [0, 0, 1, 1], [], []>, precision = #tpu.contract_precision<fp32>} : vector<8x8xf32>, vector<8x128xf32>, vector<8x128xf32> -> vector<8x128xf32>
    %43 = vector.broadcast %38 : vector<1x128xf32> to vector<8x128xf32>
    %44 = arith.addf %36, %43 : vector<8x128xf32>
    %45 = math.log %42 : vector<8x128xf32>
    %46 = arith.addf %44, %45 : vector<8x128xf32>
    %c3 = arith.constant 3 : index
    %c0_15 = arith.constant 0 : index
    %c0_16 = arith.constant 0 : index
    %47 = vector.load %arg1[%c3, %c0_15, %c0_16] : memref<8x8x128xf32, #tpu.memory_space<vmem>>, vector<1x8x128xf32>
    %48 = vector.shape_cast %47 : vector<1x8x128xf32> to vector<8x128xf32>
    %cst_17 = arith.constant dense<0xFF800000> : vector<128xf32>
    %49 = vector.multi_reduction <maximumf>, %46, %cst_17 [0] : vector<8x128xf32> to vector<128xf32>
    %50 = vector.shape_cast %49 : vector<128xf32> to vector<1x128xf32>
    %51 = vector.broadcast %50 : vector<1x128xf32> to vector<8x128xf32>
    %52 = arith.subf %46, %51 : vector<8x128xf32>
    %53 = math.exp %52 : vector<8x128xf32>
    %cst_18 = arith.constant dense<0.000000e+00> : vector<8x128xf32>
    %54 = tpu.matmul %1, %53, %cst_18 {dimension_numbers = #tpu.dot_dimension_numbers<[1], [0], [0], [1], [0, 0, 1, 1], [], []>, precision = #tpu.contract_precision<fp32>} : vector<8x8xf32>, vector<8x128xf32>, vector<8x128xf32> -> vector<8x128xf32>
    %55 = vector.broadcast %50 : vector<1x128xf32> to vector<8x128xf32>
    %56 = arith.addf %48, %55 : vector<8x128xf32>
    %57 = math.log %54 : vector<8x128xf32>
    %58 = arith.addf %56, %57 : vector<8x128xf32>
    %c4 = arith.constant 4 : index
    %c0_19 = arith.constant 0 : index
    %c0_20 = arith.constant 0 : index
    %59 = vector.load %arg1[%c4, %c0_19, %c0_20] : memref<8x8x128xf32, #tpu.memory_space<vmem>>, vector<1x8x128xf32>
    %60 = vector.shape_cast %59 : vector<1x8x128xf32> to vector<8x128xf32>
    %cst_21 = arith.constant dense<0xFF800000> : vector<128xf32>
    %61 = vector.multi_reduction <maximumf>, %58, %cst_21 [0] : vector<8x128xf32> to vector<128xf32>
    %62 = vector.shape_cast %61 : vector<128xf32> to vector<1x128xf32>
    %63 = vector.broadcast %62 : vector<1x128xf32> to vector<8x128xf32>
    %64 = arith.subf %58, %63 : vector<8x128xf32>
    %65 = math.exp %64 : vector<8x128xf32>
    %cst_22 = arith.constant dense<0.000000e+00> : vector<8x128xf32>
    %66 = tpu.matmul %1, %65, %cst_22 {dimension_numbers = #tpu.dot_dimension_numbers<[1], [0], [0], [1], [0, 0, 1, 1], [], []>, precision = #tpu.contract_precision<fp32>} : vector<8x8xf32>, vector<8x128xf32>, vector<8x128xf32> -> vector<8x128xf32>
    %67 = vector.broadcast %62 : vector<1x128xf32> to vector<8x128xf32>
    %68 = arith.addf %60, %67 : vector<8x128xf32>
    %69 = math.log %66 : vector<8x128xf32>
    %70 = arith.addf %68, %69 : vector<8x128xf32>
    %c5 = arith.constant 5 : index
    %c0_23 = arith.constant 0 : index
    %c0_24 = arith.constant 0 : index
    %71 = vector.load %arg1[%c5, %c0_23, %c0_24] : memref<8x8x128xf32, #tpu.memory_space<vmem>>, vector<1x8x128xf32>
    %72 = vector.shape_cast %71 : vector<1x8x128xf32> to vector<8x128xf32>
    %cst_25 = arith.constant dense<0xFF800000> : vector<128xf32>
    %73 = vector.multi_reduction <maximumf>, %70, %cst_25 [0] : vector<8x128xf32> to vector<128xf32>
    %74 = vector.shape_cast %73 : vector<128xf32> to vector<1x128xf32>
    %75 = vector.broadcast %74 : vector<1x128xf32> to vector<8x128xf32>
    %76 = arith.subf %70, %75 : vector<8x128xf32>
    %77 = math.exp %76 : vector<8x128xf32>
    %cst_26 = arith.constant dense<0.000000e+00> : vector<8x128xf32>
    %78 = tpu.matmul %1, %77, %cst_26 {dimension_numbers = #tpu.dot_dimension_numbers<[1], [0], [0], [1], [0, 0, 1, 1], [], []>, precision = #tpu.contract_precision<fp32>} : vector<8x8xf32>, vector<8x128xf32>, vector<8x128xf32> -> vector<8x128xf32>
    %79 = vector.broadcast %74 : vector<1x128xf32> to vector<8x128xf32>
    %80 = arith.addf %72, %79 : vector<8x128xf32>
    %81 = math.log %78 : vector<8x128xf32>
    %82 = arith.addf %80, %81 : vector<8x128xf32>
    %c6 = arith.constant 6 : index
    %c0_27 = arith.constant 0 : index
    %c0_28 = arith.constant 0 : index
    %83 = vector.load %arg1[%c6, %c0_27, %c0_28] : memref<8x8x128xf32, #tpu.memory_space<vmem>>, vector<1x8x128xf32>
    %84 = vector.shape_cast %83 : vector<1x8x128xf32> to vector<8x128xf32>
    %cst_29 = arith.constant dense<0xFF800000> : vector<128xf32>
    %85 = vector.multi_reduction <maximumf>, %82, %cst_29 [0] : vector<8x128xf32> to vector<128xf32>
    %86 = vector.shape_cast %85 : vector<128xf32> to vector<1x128xf32>
    %87 = vector.broadcast %86 : vector<1x128xf32> to vector<8x128xf32>
    %88 = arith.subf %82, %87 : vector<8x128xf32>
    %89 = math.exp %88 : vector<8x128xf32>
    %cst_30 = arith.constant dense<0.000000e+00> : vector<8x128xf32>
    %90 = tpu.matmul %1, %89, %cst_30 {dimension_numbers = #tpu.dot_dimension_numbers<[1], [0], [0], [1], [0, 0, 1, 1], [], []>, precision = #tpu.contract_precision<fp32>} : vector<8x8xf32>, vector<8x128xf32>, vector<8x128xf32> -> vector<8x128xf32>
    %91 = vector.broadcast %86 : vector<1x128xf32> to vector<8x128xf32>
    %92 = arith.addf %84, %91 : vector<8x128xf32>
    %93 = math.log %90 : vector<8x128xf32>
    %94 = arith.addf %92, %93 : vector<8x128xf32>
    %c7 = arith.constant 7 : index
    %c0_31 = arith.constant 0 : index
    %c0_32 = arith.constant 0 : index
    %95 = vector.load %arg1[%c7, %c0_31, %c0_32] : memref<8x8x128xf32, #tpu.memory_space<vmem>>, vector<1x8x128xf32>
    %96 = vector.shape_cast %95 : vector<1x8x128xf32> to vector<8x128xf32>
    %cst_33 = arith.constant dense<0xFF800000> : vector<128xf32>
    %97 = vector.multi_reduction <maximumf>, %94, %cst_33 [0] : vector<8x128xf32> to vector<128xf32>
    %98 = vector.shape_cast %97 : vector<128xf32> to vector<1x128xf32>
    %99 = vector.broadcast %98 : vector<1x128xf32> to vector<8x128xf32>
    %100 = arith.subf %94, %99 : vector<8x128xf32>
    %101 = math.exp %100 : vector<8x128xf32>
    %cst_34 = arith.constant dense<0.000000e+00> : vector<8x128xf32>
    %102 = tpu.matmul %1, %101, %cst_34 {dimension_numbers = #tpu.dot_dimension_numbers<[1], [0], [0], [1], [0, 0, 1, 1], [], []>, precision = #tpu.contract_precision<fp32>} : vector<8x8xf32>, vector<8x128xf32>, vector<8x128xf32> -> vector<8x128xf32>
    %103 = vector.broadcast %98 : vector<1x128xf32> to vector<8x128xf32>
    %104 = arith.addf %96, %103 : vector<8x128xf32>
    %105 = math.log %102 : vector<8x128xf32>
    %106 = arith.addf %104, %105 : vector<8x128xf32>
    %cst_35 = arith.constant dense<0xFF800000> : vector<128xf32>
    %107 = vector.multi_reduction <maximumf>, %106, %cst_35 [0] : vector<8x128xf32> to vector<128xf32>
    %108 = vector.shape_cast %107 : vector<128xf32> to vector<1x128xf32>
    %109 = vector.broadcast %108 : vector<1x128xf32> to vector<8x128xf32>
    %110 = arith.subf %106, %109 : vector<8x128xf32>
    %111 = math.exp %110 : vector<8x128xf32>
    %112 = vector.broadcast %4 : vector<8x1xf32> to vector<8x128xf32>
    %113 = arith.mulf %112, %111 : vector<8x128xf32>
    %cst_36 = arith.constant dense<0.000000e+00> : vector<128xf32>
    %114 = vector.multi_reduction <add>, %113, %cst_36 [0] : vector<8x128xf32> to vector<128xf32>
    %115 = vector.shape_cast %114 : vector<128xf32> to vector<1x128xf32>
    %116 = math.log %115 : vector<1x128xf32>
    %117 = arith.addf %108, %116 : vector<1x128xf32>
    %c0_37 = arith.constant 0 : index
    %c0_38 = arith.constant 0 : index
    %118 = vector.load %arg3[%c0_37, %c0_38] : memref<1x128xf32, #tpu.memory_space<vmem>>, vector<1x128xf32>
    tpu.vector_store %arg3[%c0_37, %c0_38], %117 {strides = array<i32>} : memref<1x128xf32, #tpu.memory_space<vmem>>, vector<1x128xf32>,
    return
  }
  func.func @transform_0(%arg0: i32) -> (i32, i32, i32) {
    %c0_i32 = arith.constant 0 : i32
    %c0_i32_0 = arith.constant 0 : i32
    %c0_i32_1 = arith.constant 0 : i32
    return %c0_i32, %c0_i32_0, %arg0 : i32, i32, i32
  }
  func.func @transform_1(%arg0: i32) -> (i32, i32) {
    %c0_i32 = arith.constant 0 : i32
    %c0_i32_0 = arith.constant 0 : i32
    %c0_i32_1 = arith.constant 0 : i32
    return %c0_i32, %c0_i32_0 : i32, i32
  }
  func.func @transform_2(%arg0: i32) -> (i32, i32) {
    %c0_i32 = arith.constant 0 : i32
    %c0_i32_0 = arith.constant 0 : i32
    return %c0_i32, %arg0 : i32, i32
  }
}

</mosaic_0001>

<bundles_post_ra>
// kernel: tpu_custom_call.1
= control target key start
LH: loop header
LB: loop body
LE: loop exit
PB: predicated region body
PF: predicated region fallthrough
CT: control target
= control target key end

     0   :  { %7 = vsyncpa [#allocation3], 0  ;;  %s5096_s0 = inlined_call_operand.hbm [shape: f32[8,8,256], index: 0, kind: input, shape index: {}]   ;;  %s5097_s1 = inlined_call_operand.hbm [shape: f32[8,8], index: 1, kind: input, shape index: {}]   ;;  %s5098_s2 = inlined_call_operand.hbm [shape: f32[1,256], index: 2, kind: output, shape index: {}]  }
   0x1   :  { %9 = vsyncpa [#allocation3 + $0x1], 0 }
   0x2   :  { %10 = vsyncpa [#allocation6], 0 }
   0x3   :  { %11 = vsyncpa [#allocation4], 0 }
   0x4   :  { %13 = vsyncpa [#allocation4 + $0x1], 0  ;;  %s4677_s9 = smov 0   ;;  %s4679_s10 = smov 0  }
   0x5   :  { %s4681_s11 = smov 0   ;;  %s4683_s12 = smov 0  }
   0x6 LB: > { %s4698_s13 = sadd.s32 4294967295, %s4651_s12   ;;  %s3987_s14 = sadd.s32 4294967294, %s4651_s12   ;;  %s4651_s12 = sphi %s4683_s12, %s5123_s12   ;;  %s4647_s11 = sphi %s4681_s11, %s5122_s11   ;;  %s4643_s10 = sphi %s4679_s10, %s5121_s10   ;;  %s4639_s9 = sphi %s4677_s9, %s5120_s9  }
   0x7   : > { %s4702_s15 = sadd.s32 1, %s4651_s12   ;;  %s26_s16 = sadd.s32 1, %s4647_s11 }
   0x8   : > { %s23_s17 = ssub.s32 %s4651_s12, %s4702_s15  ;;  %p33_p0 = scmp.ne.s32.totalorder %s4647_s11, %s4643_s10 }
   0x9   : > { %p24_p1 = scmp.eq.s32.totalorder %s23_s17, 0  ;;  %p34_p2 = scmp.eq.s32.totalorder %s4651_s12, 0 }
   0xa   : > { %p39_p3 = scmp.ne.s32.totalorder %s4643_s10, %s4639_s9  ;;  %p5099_p4 = scmp.eq.s32.totalorder %s4698_s13, 0 }
   0xb   : > { %s4714_s18 = scalar_select %p24_p1, %s4647_s11, %s26_s16  }
   0xc   : > { %p4716_p5 = por %p34_p2, %p33_p0  ;;  %p4722_p6 = por %p5099_p4, %p39_p3 }
   0xd   : > { %p84_p7 = scmp.eq.s32.totalorder %s4698_s13, 1  ;;  %p90_p8 = scmp.eq.s32.totalorder %s3987_s14, 1 }
   0xe   : > { %s5105_s20 = scalar_select %p4722_p6, 1, 0 }
   0xf   : > { %p3988_p9 = scmp.ge.s32.totalorder %s4651_s12, 1  ;;  %p97_p10 = scmp.lt.s32.totalorder %s4651_s12, 3 }
  0x10   : > { %p4729_p11 = por %p84_p7, %p33_p0  ;;  %p4733_p12 = por %p90_p8, %p39_p3 }
  0x11   : > { %p4737_p13 = pnand %p3988_p9, %p97_p10  ;;  %s4653_s24 = smov [#allocation5]  }
  0x12   : > { %s5106_s21 = scalar_select %p4729_p11, 1, 0 }
  0x13   : > { %s5107_s22 = scalar_select %p4733_p12, 1, 0 }
  0x14   : > { %s5108_s23 = scalar_select %p4737_p13, 1, 0 }
  0x15   : > { %p4430_p2 = pneg %p4737_p13  ;;  %s110_s25 = sshll.u32 %s4653_s24, 4  ;;  %s111_s25 = int_to_ptr.vmem [resolvable:$true] %s110_s25 }
  0x16   : > { %p4443_p4 = scmp.lt.s32.totalorder %s4651_s12, 2  ;;  %p5109_p0 = scmp.eq.s32.totalorder %s4698_s13, 0 }
  0x17   : > { %s121_s27 = sand.u32 1, %s4647_s11   ;;  %s4523_s4 = scalar_lea.hbm %s5097_s1, 128 }
  0x18   : > { %p4747_p7 = pnand %p4430_p2, %p5109_p0  ;;  %p4754_p3 = pnand %p4443_p4, %p4716_p5 }
  0x19   : > { %s3991_s29 = sshll.u32 %s121_s27, 6  ;;  %p4524_p8 = scmp.ne.s32.totalorder %s5097_s1, %s4523_s4 }
  0x1a   : > { %s5111_s28 = scalar_select %p4754_p3, 1, 0 }
  0x1b   : > { %p4525_p9 = pneg %p4747_p7  ;;  %p4530_p4 = scmp.lt.u32.totalorder %s4523_s4, %s5097_s1 }
  0x1d   : > { %p4526_p10 = pnand %p4525_p9, %p4524_p8 }
  0x1f   : > { %p4527_p2 = pneg %p4526_p10 }
  0x21   : > { %p4532_p5 = pnand %p4530_p4, %p4527_p2 }
  0x23   : > { %4535 = shalt.err (!%p4532_p5)
}
  0x24   : > { %s4536_s14 = scalar_lea.vmem %s111_s25, 128  ;;  %p4544_p11 = scmp.lt.s32.totalorder %s111_s25, %s111_s25 }
  0x25   : > { %p4537_p0 = scmp.ne.s32.totalorder %s111_s25, %s4536_s14  ;;  %p4545_p6 = scmp.lt.s32.totalorder %s4536_s14, %s4536_s14 }
  0x27   : > { %p4539_p1 = pnand %p4537_p0, %p4525_p9  ;;  %p4546_p13 = por %p4545_p6, %p4544_p11 }
  0x29   : > { %p4540_p12 = pneg %p4539_p1 }
  0x2b   : > { %p4547_p3 = pnand %p4546_p13, %p4540_p12 }
  0x2d   : > { %4550 = shalt.err (!%p4547_p3)
}
  0x2e   : > { %4433 = dma.hbm_to_vmem [thread:$0]  (!%p4747_p7), %s5097_s1, 128, %s111_s25, [#allocation6]  }
  0x2f   : > { %s3992_s19 = sshll.u32 %s4651_s12, 7  ;;  %s125_s24 = scalar_lea.vmem [#allocation2], %s3991_s29 }
  0x30   : > { %s131_s30 = sshll.u32 %s125_s24, 4  ;;  %s4778_s5 = scalar_lea.hbm %s5096_s0, %s3992_s19  ;;  %s4780_s30 = int_to_ptr.vmem [resolvable:$true] %s131_s30 }
  0x31   : > { %s4782_s26 = scalar_lea.sflag [#allocation3], %s121_s27  ;;  %s4551_s6 = scalar_lea.hbm %s4778_s5, 1024 }
  0x32   : > { %p4552_p6 = scmp.ne.s32.totalorder %s4778_s5, %s4551_s6  ;;  %p5112_p11 = scmp.ne.s32.totalorder %s5111_s28, 0 }
  0x33   : > { %s4556_s7 = scalar_lea.hbm %s5096_s0, 2048  ;;  %p4557_p7 = scmp.lt.u32.totalorder %s4778_s5, %s5096_s0 }
  0x34   : > { %p4553_p12 = pneg %p5112_p11  ;;  %p4558_p3 = scmp.lt.u32.totalorder %s4556_s7, %s4551_s6 }
  0x35   : > { %p4560_p9 = scmp.lt.u32.totalorder %s4551_s6, %s4778_s5 }
  0x36   : > { %p4554_p13 = pnand %p4553_p12, %p4552_p6  ;;  %p4559_p8 = por %p4558_p3, %p4557_p7 }
  0x38   : > { %p4555_p1 = pneg %p4554_p13  ;;  %p4561_p10 = por %p4560_p9, %p4559_p8 }
  0x3a   : > { %p4562_p2 = pnand %p4561_p10, %p4555_p1 }
  0x3c   : > { %4565 = shalt.err (!%p4562_p2)
}
  0x3d   : > { %s4566_s27 = scalar_lea.vmem %s4780_s30, 1024  ;;  %s4654_s16 = smov [#allocation2]  }
  0x3e   : > { %p4567_p4 = scmp.ne.s32.totalorder %s4780_s30, %s4566_s27  ;;  %s4571_s17 = sshll.u32 %s4654_s16, 4  ;;  %s4572_s17 = int_to_ptr.vmem [resolvable:$false] %s4571_s17 }
  0x3f   : > { %s4573_s19 = scalar_lea.vmem %s4572_s17, 2048  ;;  %p4574_p6 = scmp.lt.s32.totalorder %s4780_s30, %s4572_s17 }
  0x40   : > { %p4569_p5 = pnand %p4567_p4, %p4553_p12  ;;  %p4575_p13 = scmp.lt.s32.totalorder %s4573_s19, %s4566_s27 }
  0x42   : > { %p4570_p0 = pneg %p4569_p5  ;;  %p4576_p7 = por %p4575_p13, %p4574_p6 }
  0x44   : > { %p4577_p3 = pnand %p4576_p7, %p4570_p0 }
  0x46   : > { %4580 = shalt.err (!%p4577_p3)
}
  0x47   : > { %s4655_s24 = smov 256   ;;  %s4656_s3 = smov 128  }
  0x48   : > { %s4657_s4 = smov 8   ;;  %p5113_p12 = scmp.ne.s32.totalorder %s5108_s23, 0 }
  0x49   : > { %4437 = dma.hbm_to_vmem [thread:$0]  (!%p5112_p11), %s4778_s5, 1024, %s4780_s30, %s4782_s26, %s4655_s24, %s4656_s3, %s4657_s4  }
  0x4a   : > { %143 = sbr.rel (%p5113_p12) target bundleno = 2537 (0x9e9), region = 28  ;;  %s4813_s6 = sand.u32 (!%p5113_p12), 1, %s4643_s10  }
  0x4b   : > { %s3994_s25 = sshll.u32 (!%p5113_p12), %s4813_s6, 6  ;;  %s146_s29 = scalar_lea.sflag (!%p5113_p12), [#allocation3], %s4813_s6 }
  0x4c   : > { %s4817_s7 = scalar_lea.vmem (!%p5113_p12), [#allocation2], %s3994_s25  ;;  %p5114_p1 = scmp.ne.s32.totalorder (!%p5113_p12), %s5105_s20, 0 }
  0x51   : > { %4626 = dma.done.wait (%p5114_p1), %s146_s29, 1024  }
  0x52   : > { %4628 = vsyncadd (%p5114_p1), %s146_s29, 4294966272  ;;  %p5115_p11 = scmp.eq.s32.totalorder %s4698_s13, 0 }
  0x54   : > { %4630 = dma.done.wait (%p5115_p11), [#allocation6], 128   ;;  %p5116_p8 = pmov %p5115_p11 }
  0x55   : > { %v176_v0 = vlaneseq  ;;  %v4658_v1 = vmov 0.0   ;;  %vm4659_vm0 = vmmov 0   ;;  %v4660_v3 = vmov -1000.0   ;;  %v173_v6 = vld [vmem:[#allocation5] sm:$0xff]  ;;  %v3996_v51 = vld [vmem:[%s4817_s7 + $0x8] sm:$0xff]  ;;  %s4003_s20 = sshll.u32 %s4698_s13, 4 }
  0x56   : > { %4632 = vsyncadd (%p5116_p8), [#allocation6], 4294967168  ;;  %4102 = vmatprep.subr.mxu0 %v4658_v1  ;;  %4104 = vmatprep.mubr.msk.f32.mxu0 %vm4659_vm0, %v4658_v1  ;;  %v174_v8 = vmul.f32 1.442695, %v173_v6  ;;  %vm197_vm2 = vcmask 64512   ;;  %v187_v30 = vld [vmem:[%s4817_s7] sm:$0xff]  ;;  %s5052_s26 = scalar_lea.hbm %s5098_s2, %s4003_s20 }
  0x57   : > { %v4830_v2 = vshrl.u32 %v176_v0, 7  ;;  %4132 = vmatprep.subr.mxu1 %v4658_v1  ;;  %4134 = vmatprep.mubr.msk.f32.mxu1 %vm4659_vm0, %v4658_v1  ;;  %s172_s23 = scalar_lea.vmem [#allocation7], %s4813_s6  ;;  %s3899_s8 = scalar_lea.sflag [#allocation4], %s4813_s6 }
  0x58   : > { %4485 = vpow2.f32 %v174_v8  ;;  %s3911_s28 = sshll.u32 %s172_s23, 4  ;;  %p5117_p10 = scmp.ne.s32.totalorder %s5106_s21, 0  ;;  %s5054_s28 = int_to_ptr.vmem [resolvable:$true] %s3911_s28 }
  0x59   : > { %vm185_vm1 = vcmp.eq.s32.totalorder %v4830_v2, 6  ;;  %s4581_s14 = scalar_lea.vmem %s5054_s28, 16  ;;  %s4661_s13 = smov [#allocation7]  }
  0x5a   : > { %v186_v4 = vsel %vm185_vm1, 0.0, %v4660_v3  ;;  %p4582_p9 = scmp.ne.s32.totalorder %s5054_s28, %s4581_s14  ;;  %s4585_s27 = sshll.u32 %s4661_s13, 4  ;;  %s4586_s27 = int_to_ptr.vmem [resolvable:$false] %s4585_s27 }
  0x5b   : > { %v188_v5 = vrot.slane %v186_v4, 4  ;;  %s4587_s16 = scalar_lea.vmem %s4586_s27, 32  ;;  %p4588_p5 = scmp.lt.s32.totalorder %s5054_s28, %s4586_s27 }
  0x5c   : > { %p4583_p2 = pnand %p4582_p9, %p5117_p10  ;;  %p4589_p0 = scmp.lt.s32.totalorder %s4587_s16, %s4581_s14 }
  0x5d   : > { %v189_v7 = vmax.f32 %v186_v4, %v188_v5 }
  0x5e   : > { %p4584_p4 = pneg %p4583_p2  ;;  %p4590_p6 = por %p4589_p0, %p4588_p5 }
  0x5f   : > { %v190_v9 = vrot.slane %v189_v7, 2 }
  0x60   : > { %p4591_p13 = pnand %p4590_p6, %p4584_p4 }
  0x61   : > { %v191_v10 = vmax.f32 %v189_v7, %v190_v9 }
  0x62   : > { %v4836_v14 = vpop.eup %4485 }
  0x63   : > { %v192_v11 = vrot.slane %v191_v10, 1  ;;  %v199_v16 = vsel %vm197_vm2, %v4836_v14, 0 }
  0x64   : > { %v4839_v17 = vand.u32 4294901760, %v199_v16 }
  0x65   : > { %v193_v12 = vmax.f32 %v191_v10, %v192_v11  ;;  %v3997_v10 = vld [vmem:[%s4817_s7 + $0x10] sm:$0xff] }
  0x66   : > { %v4842_v18 = vsub.f32 %v199_v16, %v4839_v17 }
  0x67   : > { %v194_v13 = vsub.f32 %v186_v4, %v193_v12  ;;  %v647_v31 = vadd.f32 %v193_v12, %v187_v30 }
  0x68   : > { %v4845_v19 = vand.u32 4294901760, %v4842_v18 }
  0x69   : > { %v195_v15 = vmul.f32 1.442695, %v194_v13 }
  0x6a   : > { %v270_v20 = vsub.f32 %v4842_v18, %v4845_v19 }
  0x6b   : > { %4487 = vpow2.f32 %v195_v15 }
  0x6c   : > { %v4849_v22 = vand.u32 4294901760, %v270_v20 }
  0x75   : > { %v4488_v21 = vpop.eup %4487 }
  0x76   : > { %v202_v23 = vand.u32 4294901760, %v4488_v21 }
  0x78   : > { %4103 = vmatpush3.msra.mxu0 %v202_v23  ;;  %v279_v24 = vsub.f32 %v4488_v21, %v202_v23 }
  0x79   : > { %4105 = vmatmul.mubr.f32.vlgmr.msra.gmra.mrb[0].mxu0 %v4849_v22  ;;  %4107 = vmatprep.subr.mxu0 %v4658_v1 }
  0x7a   : > { %v280_v25 = vand.u32 4294901760, %v279_v24  ;;  %4109 = vmatprep.mubr.msk.f32.mxu0 %vm4659_vm0, %v4658_v1 }
  0x7c   : > { %v281_v26 = vsub.f32 %v279_v24, %v280_v25 }
  0x7e   : > { %v282_v27 = vand.u32 4294901760, %v281_v26 }
  0x80   : > { %4108 = vmatpush3.msra.mxu0 %v282_v27 }
  0x81   : > { %4110 = vmatmul.mubr.f32.vlgmr.msra.gmra.mrb[0].mxu0 %v4839_v17  ;;  %4112 = vmatprep.subr.mxu0 %v4658_v1 }
  0x82   : > { %4113 = vmatpush3.msra.mxu0 %v279_v24  ;;  %4114 = vmatprep.mubr.msk.f32.mxu0 %vm4659_vm0, %v4658_v1 }
  0x83   : > { %4117 = vmatprep.subr.mxu0 %v4658_v1 }
  0x89   : > { %4115 = vmatmul.mubr.f32.vlgmr.msra.gmra.mrb[0].mxu0 %v4842_v18 }
  0x8a   : > { %4118 = vmatpush3.msra.mxu0 %v202_v23  ;;  %4119 = vmatprep.mubr.msk.f32.mxu0 %vm4659_vm0, %v4658_v1 }
  0x8b   : > { %4122 = vmatprep.subr.mxu0 %v4658_v1 }
  0x91   : > { %4120 = vmatmul.mubr.f32.vlgmr.msra.gmra.mrb[0].mxu0 %v4845_v19 }
  0x92   : > { %4123 = vmatpush3.msra.mxu0 %v280_v25  ;;  %4124 = vmatprep.mubr.msk.f32.mxu0 %vm4659_vm0, %v4658_v1 }
  0x93   : > { %4127 = vmatprep.subr.mxu0 %v4658_v1 }
  0x99   : > { %4125 = vmatmul.mubr.f32.vlgmr.msra.gmra.mrb[0].mxu0 %v4839_v17 }
  0x9a   : > { %4128 = vmatpush3.msra.mxu0 %v202_v23  ;;  %4129 = vmatprep.mubr.msk.f32.mxu0 %vm4659_vm0, %v4658_v1 }
  0x9b   : > { %4162 = vmatprep.subr.mxu0 %v4658_v1 }
  0xa1   : > { %4130 = vmatmul.mubr.f32.vlgmr.msra.gmra.mrb[0].mxu0 %v4839_v17 }
  0xa2   : > { %4164 = vmatprep.mubr.msk.f32.mxu0 %vm4659_vm0, %v4658_v1 }
 0x174   : > { %v643_v28 = vpop.f32.mrb[0].mxu0 }
 0x175   : > { %4489 = vlog2.f32 %v643_v28  ;;  %v4131_v29 = vpop.f32.mrb[1].mxu0 }
 0x17f   : > { %v4490_v32 = vpop.eup %4489 }
 0x180   : > { %v649_v33 = vmul.f32 0.6931472, %v4490_v32 }
 0x182   : > { %v650_v34 = vadd.f32 %v649_v33, %v647_v31 }
 0x184   : > { %v653_v35 = vrot.slane %v650_v34, 4 }
 0x186   : > { %v654_v36 = vmax.f32 %v650_v34, %v653_v35 }
 0x188   : > { %v655_v37 = vrot.slane %v654_v36, 2 }
 0x18a   : > { %v656_v38 = vmax.f32 %v654_v36, %v655_v37  ;;  %v3998_v36 = vld [vmem:[%s4817_s7 + $0x18] sm:$0xff] }
 0x18c   : > { %v657_v39 = vrot.slane %v656_v38, 1 }
 0x18e   : > { %v658_v40 = vmax.f32 %v656_v38, %v657_v39 }
 0x190   : > { %v659_v41 = vsub.f32 %v650_v34, %v658_v40  ;;  %v1108_v53 = vadd.f32 %v3996_v51, %v658_v40 }
 0x192   : > { %v660_v42 = vmul.f32 1.442695, %v659_v41 }
 0x194   : > { %4491 = vpow2.f32 %v660_v42 }
 0x19e   : > { %v4492_v43 = vpop.eup %4491 }
 0x19f   : > { %v663_v44 = vand.u32 4294901760, %v4492_v43 }
 0x1a1   : > { %4133 = vmatpush3.msra.mxu1 %v663_v44  ;;  %v740_v45 = vsub.f32 %v4492_v43, %v663_v44 }
 0x1a2   : > { %4135 = vmatmul.mubr.f32.vlgmr.msra.gmra.mrb[0].mxu1 %v4849_v22  ;;  %4137 = vmatprep.subr.mxu1 %v4658_v1 }
 0x1a3   : > { %v741_v46 = vand.u32 4294901760, %v740_v45  ;;  %4139 = vmatprep.mubr.msk.f32.mxu1 %vm4659_vm0, %v4658_v1 }
 0x1a5   : > { %v742_v47 = vsub.f32 %v740_v45, %v741_v46 }
 0x1a7   : > { %v743_v48 = vand.u32 4294901760, %v742_v47 }
 0x1a9   : > { %4138 = vmatpush3.msra.mxu1 %v743_v48 }
 0x1aa   : > { %4140 = vmatmul.mubr.f32.vlgmr.msra.gmra.mrb[0].mxu1 %v4839_v17  ;;  %4142 = vmatprep.subr.mxu1 %v4658_v1 }
 0x1ab   : > { %4143 = vmatpush3.msra.mxu1 %v740_v45  ;;  %4144 = vmatprep.mubr.msk.f32.mxu1 %vm4659_vm0, %v4658_v1 }
 0x1ac   : > { %4147 = vmatprep.subr.mxu1 %v4658_v1 }
 0x1b2   : > { %4145 = vmatmul.mubr.f32.vlgmr.msra.gmra.mrb[0].mxu1 %v4842_v18 }
 0x1b3   : > { %4148 = vmatpush3.msra.mxu1 %v663_v44  ;;  %4149 = vmatprep.mubr.msk.f32.mxu1 %vm4659_vm0, %v4658_v1 }
 0x1b4   : > { %4152 = vmatprep.subr.mxu1 %v4658_v1 }
 0x1ba   : > { %4150 = vmatmul.mubr.f32.vlgmr.msra.gmra.mrb[0].mxu1 %v4845_v19 }
 0x1bb   : > { %4153 = vmatpush3.msra.mxu1 %v741_v46  ;;  %4154 = vmatprep.mubr.msk.f32.mxu1 %vm4659_vm0, %v4658_v1 }
 0x1bc   : > { %4157 = vmatprep.subr.mxu1 %v4658_v1 }
 0x1c2   : > { %4155 = vmatmul.mubr.f32.vlgmr.msra.gmra.mrb[0].mxu1 %v4839_v17 }
 0x1c3   : > { %4158 = vmatpush3.msra.mxu1 %v663_v44  ;;  %4159 = vmatprep.mubr.msk.f32.mxu1 %vm4659_vm0, %v4658_v1 }
 0x1c4   : > { %4192 = vmatprep.subr.mxu1 %v4658_v1 }
 0x1ca   : > { %4160 = vmatmul.mubr.f32.vlgmr.msra.gmra.mrb[0].mxu1 %v4839_v17 }
 0x1cb   : > { %4194 = vmatprep.mubr.msk.f32.mxu1 %vm4659_vm0, %v4658_v1 }
 0x29d   : > { %v1104_v49 = vpop.f32.mrb[0].mxu1 }
 0x29e   : > { %4493 = vlog2.f32 %v1104_v49  ;;  %v4161_v50 = vpop.f32.mrb[1].mxu1 }
 0x2a8   : > { %v4494_v52 = vpop.eup %4493 }
 0x2a9   : > { %v1110_v54 = vmul.f32 0.6931472, %v4494_v52 }
 0x2ab   : > { %v1111_v55 = vadd.f32 %v1110_v54, %v1108_v53 }
 0x2ad   : > { %v1114_v56 = vrot.slane %v1111_v55, 4 }
 0x2af   : > { %v1115_v57 = vmax.f32 %v1111_v55, %v1114_v56 }
 0x2b1   : > { %v1116_v58 = vrot.slane %v1115_v57, 2 }
 0x2b3   : > { %v1117_v59 = vmax.f32 %v1115_v57, %v1116_v58  ;;  %v3999_v57 = vld [vmem:[%s4817_s7 + $0x20] sm:$0xff] }
 0x2b5   : > { %v1118_v60 = vrot.slane %v1117_v59, 1 }
 0x2b7   : > { %v1119_v61 = vmax.f32 %v1117_v59, %v1118_v60 }
 0x2b9   : > { %v1120_v62 = vsub.f32 %v1111_v55, %v1119_v61  ;;  %v1569_v12 = vadd.f32 %v3997_v10, %v1119_v61 }
 0x2bb   : > { %v1121_v63 = vmul.f32 1.442695, %v1120_v62 }
 0x2bd   : > { %4495 = vpow2.f32 %v1121_v63 }
 0x2c7   : > { %v4496_v0 = vpop.eup %4495 }
 0x2c8   : > { %v1124_v3 = vand.u32 4294901760, %v4496_v0 }
 0x2ca   : > { %4163 = vmatpush3.msra.mxu0 %v1124_v3  ;;  %v1201_v4 = vsub.f32 %v4496_v0, %v1124_v3 }
 0x2cb   : > { %4165 = vmatmul.mubr.f32.vlgmr.msra.gmra.mrb[2].mxu0 %v4849_v22  ;;  %4167 = vmatprep.subr.mxu0 %v4658_v1 }
 0x2cc   : > { %v1202_v5 = vand.u32 4294901760, %v1201_v4  ;;  %4169 = vmatprep.mubr.msk.f32.mxu0 %vm4659_vm0, %v4658_v1 }
 0x2ce   : > { %v1203_v6 = vsub.f32 %v1201_v4, %v1202_v5 }
 0x2d0   : > { %v1204_v7 = vand.u32 4294901760, %v1203_v6 }
 0x2d2   : > { %4168 = vmatpush3.msra.mxu0 %v1204_v7 }
 0x2d3   : > { %4170 = vmatmul.mubr.f32.vlgmr.msra.gmra.mrb[2].mxu0 %v4839_v17  ;;  %4172 = vmatprep.subr.mxu0 %v4658_v1 }
 0x2d4   : > { %4173 = vmatpush3.msra.mxu0 %v1201_v4  ;;  %4174 = vmatprep.mubr.msk.f32.mxu0 %vm4659_vm0, %v4658_v1 }
 0x2d5   : > { %4177 = vmatprep.subr.mxu0 %v4658_v1 }
 0x2db   : > { %4175 = vmatmul.mubr.f32.vlgmr.msra.gmra.mrb[2].mxu0 %v4842_v18 }
 0x2dc   : > { %4178 = vmatpush3.msra.mxu0 %v1124_v3  ;;  %4179 = vmatprep.mubr.msk.f32.mxu0 %vm4659_vm0, %v4658_v1 }
 0x2dd   : > { %4182 = vmatprep.subr.mxu0 %v4658_v1 }
 0x2e3   : > { %4180 = vmatmul.mubr.f32.vlgmr.msra.gmra.mrb[2].mxu0 %v4845_v19 }
 0x2e4   : > { %4183 = vmatpush3.msra.mxu0 %v1202_v5  ;;  %4184 = vmatprep.mubr.msk.f32.mxu0 %vm4659_vm0, %v4658_v1 }
 0x2e5   : > { %4187 = vmatprep.subr.mxu0 %v4658_v1 }
 0x2eb   : > { %4185 = vmatmul.mubr.f32.vlgmr.msra.gmra.mrb[2].mxu0 %v4839_v17 }
 0x2ec   : > { %4188 = vmatpush3.msra.mxu0 %v1124_v3  ;;  %4189 = vmatprep.mubr.msk.f32.mxu0 %vm4659_vm0, %v4658_v1 }
 0x2ed   : > { %4222 = vmatprep.subr.mxu0 %v4658_v1 }
 0x2f3   : > { %4190 = vmatmul.mubr.f32.vlgmr.msra.gmra.mrb[2].mxu0 %v4839_v17 }
 0x2f4   : > { %4224 = vmatprep.mubr.msk.f32.mxu0 %vm4659_vm0, %v4658_v1 }
 0x3c6   : > { %v1565_v8 = vpop.f32.mrb[2].mxu0 }
 0x3c7   : > { %4497 = vlog2.f32 %v1565_v8  ;;  %v4191_v9 = vpop.f32.mrb[3].mxu0 }
 0x3d1   : > { %v4498_v11 = vpop.eup %4497 }
 0x3d2   : > { %v1571_v13 = vmul.f32 0.6931472, %v4498_v11 }
 0x3d4   : > { %v1572_v15 = vadd.f32 %v1571_v13, %v1569_v12 }
 0x3d6   : > { %v1575_v16 = vrot.slane %v1572_v15, 4 }
 0x3d8   : > { %v1576_v20 = vmax.f32 %v1572_v15, %v1575_v16 }
 0x3da   : > { %v1577_v21 = vrot.slane %v1576_v20, 2 }
 0x3dc   : > { %v1578_v23 = vmax.f32 %v1576_v20, %v1577_v21  ;;  %v4000_v20 = vld [vmem:[%s4817_s7 + $0x28] sm:$0xff] }
 0x3de   : > { %v1579_v24 = vrot.slane %v1578_v23, 1 }
 0x3e0   : > { %v1580_v25 = vmax.f32 %v1578_v23, %v1579_v24 }
 0x3e2   : > { %v1581_v26 = vsub.f32 %v1572_v15, %v1580_v25  ;;  %v2030_v38 = vadd.f32 %v3998_v36, %v1580_v25 }
 0x3e4   : > { %v1582_v27 = vmul.f32 1.442695, %v1581_v26 }
 0x3e6   : > { %4499 = vpow2.f32 %v1582_v27 }
 0x3f0   : > { %v4500_v28 = vpop.eup %4499 }
 0x3f1   : > { %v1585_v29 = vand.u32 4294901760, %v4500_v28 }
 0x3f3   : > { %4193 = vmatpush3.msra.mxu1 %v1585_v29  ;;  %v1662_v30 = vsub.f32 %v4500_v28, %v1585_v29 }
 0x3f4   : > { %4195 = vmatmul.mubr.f32.vlgmr.msra.gmra.mrb[2].mxu1 %v4849_v22  ;;  %4197 = vmatprep.subr.mxu1 %v4658_v1 }
 0x3f5   : > { %v1663_v31 = vand.u32 4294901760, %v1662_v30  ;;  %4199 = vmatprep.mubr.msk.f32.mxu1 %vm4659_vm0, %v4658_v1 }
 0x3f7   : > { %v1664_v32 = vsub.f32 %v1662_v30, %v1663_v31 }
 0x3f9   : > { %v1665_v33 = vand.u32 4294901760, %v1664_v32 }
 0x3fb   : > { %4198 = vmatpush3.msra.mxu1 %v1665_v33 }
 0x3fc   : > { %4200 = vmatmul.mubr.f32.vlgmr.msra.gmra.mrb[2].mxu1 %v4839_v17  ;;  %4202 = vmatprep.subr.mxu1 %v4658_v1 }
 0x3fd   : > { %4203 = vmatpush3.msra.mxu1 %v1662_v30  ;;  %4204 = vmatprep.mubr.msk.f32.mxu1 %vm4659_vm0, %v4658_v1 }
 0x3fe   : > { %4207 = vmatprep.subr.mxu1 %v4658_v1 }
 0x404   : > { %4205 = vmatmul.mubr.f32.vlgmr.msra.gmra.mrb[2].mxu1 %v4842_v18 }
 0x405   : > { %4208 = vmatpush3.msra.mxu1 %v1585_v29  ;;  %4209 = vmatprep.mubr.msk.f32.mxu1 %vm4659_vm0, %v4658_v1 }
 0x406   : > { %4212 = vmatprep.subr.mxu1 %v4658_v1 }
 0x40c   : > { %4210 = vmatmul.mubr.f32.vlgmr.msra.gmra.mrb[2].mxu1 %v4845_v19 }
 0x40d   : > { %4213 = vmatpush3.msra.mxu1 %v1663_v31  ;;  %4214 = vmatprep.mubr.msk.f32.mxu1 %vm4659_vm0, %v4658_v1 }
 0x40e   : > { %4217 = vmatprep.subr.mxu1 %v4658_v1 }
 0x414   : > { %4215 = vmatmul.mubr.f32.vlgmr.msra.gmra.mrb[2].mxu1 %v4839_v17 }
 0x415   : > { %4218 = vmatpush3.msra.mxu1 %v1585_v29  ;;  %4219 = vmatprep.mubr.msk.f32.mxu1 %vm4659_vm0, %v4658_v1 }
 0x416   : > { %4252 = vmatprep.subr.mxu1 %v4658_v1 }
 0x41c   : > { %4220 = vmatmul.mubr.f32.vlgmr.msra.gmra.mrb[2].mxu1 %v4839_v17 }
 0x41d   : > { %4254 = vmatprep.mubr.msk.f32.mxu1 %vm4659_vm0, %v4658_v1 }
 0x4ef   : > { %v2026_v34 = vpop.f32.mrb[2].mxu1 }
 0x4f0   : > { %4501 = vlog2.f32 %v2026_v34  ;;  %v4221_v35 = vpop.f32.mrb[3].mxu1 }
 0x4fa   : > { %v4502_v37 = vpop.eup %4501 }
 0x4fb   : > { %v2032_v39 = vmul.f32 0.6931472, %v4502_v37 }
 0x4fd   : > { %v2033_v40 = vadd.f32 %v2032_v39, %v2030_v38 }
 0x4ff   : > { %v2036_v41 = vrot.slane %v2033_v40, 4 }
 0x501   : > { %v2037_v42 = vmax.f32 %v2033_v40, %v2036_v41 }
 0x503   : > { %v2038_v43 = vrot.slane %v2037_v42, 2 }
 0x505   : > { %v2039_v44 = vmax.f32 %v2037_v42, %v2038_v43 }
 0x507   : > { %v2040_v45 = vrot.slane %v2039_v44, 1 }
 0x509   : > { %v2041_v46 = vmax.f32 %v2039_v44, %v2040_v45  ;;  %v4001_v44 = vld [vmem:[%s4817_s7 + $0x30] sm:$0xff] }
 0x50b   : > { %v2042_v47 = vsub.f32 %v2033_v40, %v2041_v46  ;;  %v2491_v59 = vadd.f32 %v3999_v57, %v2041_v46  ;;  %v178_v40 = vsub.s32 7, %v4830_v2 }
 0x50d   : > { %v2043_v48 = vmul.f32 1.442695, %v2042_v47  ;;  %v179_v41 = vrot.slane %v4836_v14, %v178_v40 }
 0x50f   : > { %4503 = vpow2.f32 %v2043_v48  ;;  %181 = vbcast.lane.b32.xlu0 %v179_v41, 256 }
 0x519   : > { %v4504_v49 = vpop.eup %4503 }
 0x51a   : > { %v2046_v50 = vand.u32 4294901760, %v4504_v49 }
 0x51c   : > { %4223 = vmatpush3.msra.mxu0 %v2046_v50  ;;  %v2123_v51 = vsub.f32 %v4504_v49, %v2046_v50 }
 0x51d   : > { %4225 = vmatmul.mubr.f32.vlgmr.msra.gmra.mrb[4].mxu0 %v4849_v22  ;;  %4227 = vmatprep.subr.mxu0 %v4658_v1 }
 0x51e   : > { %v2124_v52 = vand.u32 4294901760, %v2123_v51  ;;  %4229 = vmatprep.mubr.msk.f32.mxu0 %vm4659_vm0, %v4658_v1 }
 0x520   : > { %v2125_v53 = vsub.f32 %v2123_v51, %v2124_v52 }
 0x522   : > { %v2126_v54 = vand.u32 4294901760, %v2125_v53 }
 0x524   : > { %4228 = vmatpush3.msra.mxu0 %v2126_v54 }
 0x525   : > { %4230 = vmatmul.mubr.f32.vlgmr.msra.gmra.mrb[4].mxu0 %v4839_v17  ;;  %4232 = vmatprep.subr.mxu0 %v4658_v1 }
 0x526   : > { %4233 = vmatpush3.msra.mxu0 %v2123_v51  ;;  %4234 = vmatprep.mubr.msk.f32.mxu0 %vm4659_vm0, %v4658_v1 }
 0x527   : > { %4237 = vmatprep.subr.mxu0 %v4658_v1 }
 0x52d   : > { %4235 = vmatmul.mubr.f32.vlgmr.msra.gmra.mrb[4].mxu0 %v4842_v18 }
 0x52e   : > { %4238 = vmatpush3.msra.mxu0 %v2046_v50  ;;  %4239 = vmatprep.mubr.msk.f32.mxu0 %vm4659_vm0, %v4658_v1 }
 0x52f   : > { %4242 = vmatprep.subr.mxu0 %v4658_v1 }
 0x535   : > { %4240 = vmatmul.mubr.f32.vlgmr.msra.gmra.mrb[4].mxu0 %v4845_v19 }
 0x536   : > { %4243 = vmatpush3.msra.mxu0 %v2124_v52  ;;  %4244 = vmatprep.mubr.msk.f32.mxu0 %vm4659_vm0, %v4658_v1 }
 0x537   : > { %4247 = vmatprep.subr.mxu0 %v4658_v1 }
 0x53d   : > { %4245 = vmatmul.mubr.f32.vlgmr.msra.gmra.mrb[4].mxu0 %v4839_v17 }
 0x53e   : > { %4248 = vmatpush3.msra.mxu0 %v2046_v50  ;;  %4249 = vmatprep.mubr.msk.f32.mxu0 %vm4659_vm0, %v4658_v1 }
 0x53f   : > { %4282 = vmatprep.subr.mxu0 %v4658_v1 }
 0x545   : > { %4250 = vmatmul.mubr.f32.vlgmr.msra.gmra.mrb[4].mxu0 %v4839_v17 }
 0x546   : > { %4284 = vmatprep.mubr.msk.f32.mxu0 %vm4659_vm0, %v4658_v1 }
 0x618   : > { %v2487_v55 = vpop.f32.mrb[4].mxu0 }
 0x619   : > { %4505 = vlog2.f32 %v2487_v55  ;;  %v4251_v56 = vpop.f32.mrb[5].mxu0 }
 0x623   : > { %v4506_v58 = vpop.eup %4505 }
 0x624   : > { %v2493_v60 = vmul.f32 0.6931472, %v4506_v58 }
 0x626   : > { %v2494_v61 = vadd.f32 %v2493_v60, %v2491_v59 }
 0x628   : > { %v2497_v62 = vrot.slane %v2494_v61, 4 }
 0x62a   : > { %v2498_v63 = vmax.f32 %v2494_v61, %v2497_v62 }
 0x62c   : > { %v2499_v0 = vrot.slane %v2498_v63, 2 }
 0x62e   : > { %v2500_v3 = vmax.f32 %v2498_v63, %v2499_v0 }
 0x630   : > { %v2501_v4 = vrot.slane %v2500_v3, 1 }
 0x632   : > { %v2502_v5 = vmax.f32 %v2500_v3, %v2501_v4 }
 0x634   : > { %v2503_v6 = vsub.f32 %v2494_v61, %v2502_v5  ;;  %v2952_v23 = vadd.f32 %v4000_v20, %v2502_v5  ;;  %v4002_v61 = vld [vmem:[%s4817_s7 + $0x38] sm:$0xff] }
 0x636   : > { %v2504_v7 = vmul.f32 1.442695, %v2503_v6 }
 0x638   : > { %4507 = vpow2.f32 %v2504_v7 }
 0x642   : > { %v4508_v8 = vpop.eup %4507 }
 0x643   : > { %v2507_v9 = vand.u32 4294901760, %v4508_v8 }
 0x645   : > { %4253 = vmatpush3.msra.mxu1 %v2507_v9  ;;  %v2584_v10 = vsub.f32 %v4508_v8, %v2507_v9 }
 0x646   : > { %4255 = vmatmul.mubr.f32.vlgmr.msra.gmra.mrb[4].mxu1 %v4849_v22  ;;  %4257 = vmatprep.subr.mxu1 %v4658_v1 }
 0x647   : > { %v2585_v11 = vand.u32 4294901760, %v2584_v10  ;;  %4259 = vmatprep.mubr.msk.f32.mxu1 %vm4659_vm0, %v4658_v1 }
 0x649   : > { %v2586_v12 = vsub.f32 %v2584_v10, %v2585_v11 }
 0x64b   : > { %v2587_v13 = vand.u32 4294901760, %v2586_v12 }
 0x64d   : > { %4258 = vmatpush3.msra.mxu1 %v2587_v13 }
 0x64e   : > { %4260 = vmatmul.mubr.f32.vlgmr.msra.gmra.mrb[4].mxu1 %v4839_v17  ;;  %4262 = vmatprep.subr.mxu1 %v4658_v1 }
 0x64f   : > { %4263 = vmatpush3.msra.mxu1 %v2584_v10  ;;  %4264 = vmatprep.mubr.msk.f32.mxu1 %vm4659_vm0, %v4658_v1 }
 0x650   : > { %4267 = vmatprep.subr.mxu1 %v4658_v1 }
 0x656   : > { %4265 = vmatmul.mubr.f32.vlgmr.msra.gmra.mrb[4].mxu1 %v4842_v18 }
 0x657   : > { %4268 = vmatpush3.msra.mxu1 %v2507_v9  ;;  %4269 = vmatprep.mubr.msk.f32.mxu1 %vm4659_vm0, %v4658_v1 }
 0x658   : > { %4272 = vmatprep.subr.mxu1 %v4658_v1 }
 0x65e   : > { %4270 = vmatmul.mubr.f32.vlgmr.msra.gmra.mrb[4].mxu1 %v4845_v19 }
 0x65f   : > { %4273 = vmatpush3.msra.mxu1 %v2585_v11  ;;  %4274 = vmatprep.mubr.msk.f32.mxu1 %vm4659_vm0, %v4658_v1 }
 0x660   : > { %4277 = vmatprep.subr.mxu1 %v4658_v1 }
 0x666   : > { %4275 = vmatmul.mubr.f32.vlgmr.msra.gmra.mrb[4].mxu1 %v4839_v17 }
 0x667   : > { %4278 = vmatpush3.msra.mxu1 %v2507_v9  ;;  %4279 = vmatprep.mubr.msk.f32.mxu1 %vm4659_vm0, %v4658_v1 }
 0x668   : > { %4312 = vmatprep.subr.mxu1 %v4658_v1 }
 0x66e   : > { %4280 = vmatmul.mubr.f32.vlgmr.msra.gmra.mrb[4].mxu1 %v4839_v17 }
 0x66f   : > { %4314 = vmatprep.mubr.msk.f32.mxu1 %vm4659_vm0, %v4658_v1 }
 0x741   : > { %v2948_v15 = vpop.f32.mrb[4].mxu1 }
 0x742   : > { %4509 = vlog2.f32 %v2948_v15  ;;  %v4281_v16 = vpop.f32.mrb[5].mxu1 }
 0x74c   : > { %v4510_v21 = vpop.eup %4509 }
 0x74d   : > { %v2954_v24 = vmul.f32 0.6931472, %v4510_v21 }
 0x74f   : > { %v2955_v25 = vadd.f32 %v2954_v24, %v2952_v23 }
 0x751   : > { %v2958_v26 = vrot.slane %v2955_v25, 4 }
 0x753   : > { %v2959_v27 = vmax.f32 %v2955_v25, %v2958_v26 }
 0x755   : > { %v2960_v28 = vrot.slane %v2959_v27, 2 }
 0x757   : > { %v2961_v29 = vmax.f32 %v2959_v27, %v2960_v28 }
 0x759   : > { %v2962_v30 = vrot.slane %v2961_v29, 1 }
 0x75b   : > { %v2963_v31 = vmax.f32 %v2961_v29, %v2962_v30 }
 0x75d   : > { %v2964_v32 = vsub.f32 %v2955_v25, %v2963_v31  ;;  %v3413_v46 = vadd.f32 %v4001_v44, %v2963_v31 }
 0x75f   : > { %v2965_v33 = vmul.f32 1.442695, %v2964_v32 }
 0x761   : > { %4511 = vpow2.f32 %v2965_v33 }
 0x76b   : > { %v4512_v34 = vpop.eup %4511 }
 0x76c   : > { %v2968_v35 = vand.u32 4294901760, %v4512_v34 }
 0x76e   : > { %4283 = vmatpush3.msra.mxu0 %v2968_v35  ;;  %v3045_v36 = vsub.f32 %v4512_v34, %v2968_v35 }
 0x76f   : > { %4285 = vmatmul.mubr.f32.vlgmr.msra.gmra.mrb[6].mxu0 %v4849_v22  ;;  %4287 = vmatprep.subr.mxu0 %v4658_v1 }
 0x770   : > { %v3046_v37 = vand.u32 4294901760, %v3045_v36  ;;  %4289 = vmatprep.mubr.msk.f32.mxu0 %vm4659_vm0, %v4658_v1 }
 0x772   : > { %v3047_v38 = vsub.f32 %v3045_v36, %v3046_v37 }
 0x774   : > { %v3048_v39 = vand.u32 4294901760, %v3047_v38 }
 0x776   : > { %4288 = vmatpush3.msra.mxu0 %v3048_v39 }
 0x777   : > { %4290 = vmatmul.mubr.f32.vlgmr.msra.gmra.mrb[6].mxu0 %v4839_v17  ;;  %4292 = vmatprep.subr.mxu0 %v4658_v1 }
 0x778   : > { %4293 = vmatpush3.msra.mxu0 %v3045_v36  ;;  %4294 = vmatprep.mubr.msk.f32.mxu0 %vm4659_vm0, %v4658_v1 }
 0x779   : > { %4297 = vmatprep.subr.mxu0 %v4658_v1 }
 0x77f   : > { %4295 = vmatmul.mubr.f32.vlgmr.msra.gmra.mrb[6].mxu0 %v4842_v18 }
 0x780   : > { %4298 = vmatpush3.msra.mxu0 %v2968_v35  ;;  %4299 = vmatprep.mubr.msk.f32.mxu0 %vm4659_vm0, %v4658_v1 }
 0x781   : > { %4302 = vmatprep.subr.mxu0 %v4658_v1 }
 0x787   : > { %4300 = vmatmul.mubr.f32.vlgmr.msra.gmra.mrb[6].mxu0 %v4845_v19 }
 0x788   : > { %4303 = vmatpush3.msra.mxu0 %v3046_v37  ;;  %4304 = vmatprep.mubr.msk.f32.mxu0 %vm4659_vm0, %v4658_v1 }
 0x789   : > { %4307 = vmatprep.subr.mxu0 %v4658_v1 }
 0x78f   : > { %4305 = vmatmul.mubr.f32.vlgmr.msra.gmra.mrb[6].mxu0 %v4839_v17 }
 0x790   : > { %4308 = vmatpush3.msra.mxu0 %v2968_v35  ;;  %4309 = vmatprep.mubr.msk.f32.mxu0 %vm4659_vm0, %v4658_v1 }
 0x797   : > { %4310 = vmatmul.mubr.f32.vlgmr.msra.gmra.mrb[6].mxu0 %v4839_v17 }
 0x86a   : > { %v3409_v42 = vpop.f32.mrb[6].mxu0 }
 0x86b   : > { %4513 = vlog2.f32 %v3409_v42  ;;  %v4311_v43 = vpop.f32.mrb[7].mxu0 }
 0x875   : > { %v4514_v45 = vpop.eup %4513 }
 0x876   : > { %v3415_v47 = vmul.f32 0.6931472, %v4514_v45 }
 0x878   : > { %v3416_v48 = vadd.f32 %v3415_v47, %v3413_v46 }
 0x87a   : > { %v3419_v49 = vrot.slane %v3416_v48, 4 }
 0x87c   : > { %v3420_v50 = vmax.f32 %v3416_v48, %v3419_v49 }
 0x87e   : > { %v3421_v51 = vrot.slane %v3420_v50, 2 }
 0x880   : > { %v3422_v52 = vmax.f32 %v3420_v50, %v3421_v51 }
 0x882   : > { %v3423_v53 = vrot.slane %v3422_v52, 1 }
 0x884   : > { %v3424_v54 = vmax.f32 %v3422_v52, %v3423_v53 }
 0x886   : > { %v3425_v55 = vsub.f32 %v3416_v48, %v3424_v54 }
 0x888   : > { %v3426_v56 = vmul.f32 1.442695, %v3425_v55 }
 0x88a   : > { %4515 = vpow2.f32 %v3426_v56 }
 0x894   : > { %v4516_v2 = vpop.eup %4515 }
 0x895   : > { %v3429_v14 = vand.u32 4294901760, %v4516_v2 }
 0x897   : > { %4313 = vmatpush3.msra.mxu1 %v3429_v14  ;;  %v3506_v57 = vsub.f32 %v4516_v2, %v3429_v14 }
 0x898   : > { %4315 = vmatmul.mubr.f32.vlgmr.msra.gmra.mrb[6].mxu1 %v4849_v22  ;;  %4317 = vmatprep.subr.mxu1 %v4658_v1 }
 0x899   : > { %v3507_v58 = vand.u32 4294901760, %v3506_v57  ;;  %4319 = vmatprep.mubr.msk.f32.mxu1 %vm4659_vm0, %v4658_v1 }
 0x89b   : > { %v3508_v59 = vsub.f32 %v3506_v57, %v3507_v58 }
 0x89d   : > { %v3509_v60 = vand.u32 4294901760, %v3508_v59 }
 0x89f   : > { %4318 = vmatpush3.msra.mxu1 %v3509_v60 }
 0x8a0   : > { %4320 = vmatmul.mubr.f32.vlgmr.msra.gmra.mrb[6].mxu1 %v4839_v17  ;;  %4322 = vmatprep.subr.mxu1 %v4658_v1 }
 0x8a1   : > { %4323 = vmatpush3.msra.mxu1 %v3506_v57  ;;  %4324 = vmatprep.mubr.msk.f32.mxu1 %vm4659_vm0, %v4658_v1 }
 0x8a2   : > { %4327 = vmatprep.subr.mxu1 %v4658_v1 }
 0x8a8   : > { %4325 = vmatmul.mubr.f32.vlgmr.msra.gmra.mrb[6].mxu1 %v4842_v18 }
 0x8a9   : > { %4328 = vmatpush3.msra.mxu1 %v3429_v14  ;;  %4329 = vmatprep.mubr.msk.f32.mxu1 %vm4659_vm0, %v4658_v1 }
 0x8aa   : > { %4332 = vmatprep.subr.mxu1 %v4658_v1 }
 0x8b0   : > { %4330 = vmatmul.mubr.f32.vlgmr.msra.gmra.mrb[6].mxu1 %v4845_v19  ;;  %v3874_v19 = vadd.f32 %v4002_v61, %v3424_v54 }
 0x8b1   : > { %4333 = vmatpush3.msra.mxu1 %v3507_v58  ;;  %4334 = vmatprep.mubr.msk.f32.mxu1 %vm4659_vm0, %v4658_v1 }
 0x8b2   : > { %4337 = vmatprep.subr.mxu1 %v4658_v1 }
 0x8b8   : > { %4335 = vmatmul.mubr.f32.vlgmr.msra.gmra.mrb[6].mxu1 %v4839_v17 }
 0x8b9   : > { %4338 = vmatpush3.msra.mxu1 %v3429_v14  ;;  %4339 = vmatprep.mubr.msk.f32.mxu1 %vm4659_vm0, %v4658_v1 }
 0x8c0   : > { %4340 = vmatmul.mubr.f32.vlgmr.msra.gmra.mrb[6].mxu1 %v4839_v17  ;;  %v182_v17 = vpop.permute.xlu0 %181 }
 0x993   : > { %v3870_v18 = vpop.f32.mrb[6].mxu1 }
 0x994   : > { %4517 = vlog2.f32 %v3870_v18  ;;  %v4341_v22 = vpop.f32.mrb[7].mxu1 }
 0x99e   : > { %v4518_v62 = vpop.eup %4517 }
 0x99f   : > { %v3876_v63 = vmul.f32 0.6931472, %v4518_v62 }
 0x9a1   : > { %v3877_v0 = vadd.f32 %v3876_v63, %v3874_v19 }
 0x9a3   : > { %v3878_v3 = vrot.slane %v3877_v0, 4 }
 0x9a5   : > { %v3879_v4 = vmax.f32 %v3877_v0, %v3878_v3 }
 0x9a7   : > { %v3880_v5 = vrot.slane %v3879_v4, 2 }
 0x9a9   : > { %v3881_v6 = vmax.f32 %v3879_v4, %v3880_v5 }
 0x9ab   : > { %v3882_v7 = vrot.slane %v3881_v6, 1 }
 0x9ad   : > { %v3883_v8 = vmax.f32 %v3881_v6, %v3882_v7 }
 0x9af   : > { %v3884_v9 = vsub.f32 %v3877_v0, %v3883_v8 }
 0x9b1   : > { %v3885_v1 = vmul.f32 1.442695, %v3884_v9 }
 0x9b3   : > { %4519 = vpow2.f32 %v3885_v1 }
 0x9bd   : > { %v4520_v10 = vpop.eup %4519 }
 0x9be   : > { %v3887_v11 = vmul.f32 %v4520_v10, %v182_v17 }
 0x9c0   : > { %v3888_v12 = vrot.slane %v3887_v11, 4 }
 0x9c2   : > { %v3889_v13 = vadd.f32 %v3888_v12, %v3887_v11 }
 0x9c4   : > { %v3890_v15 = vrot.slane %v3889_v13, 2 }
 0x9c6   : > { %v3891_v16 = vadd.f32 %v3890_v15, %v3889_v13 }
 0x9c8   : > { %v3892_v20 = vrot.slane %v3891_v16, 1 }
 0x9ca   : > { %v3893_v21 = vadd.f32 %v3892_v20, %v3891_v16 }
 0x9cc   : > { %4521 = vlog2.f32 %v3893_v21 }
 0x9d6   : > { %v4522_v23 = vpop.eup %4521 }
 0x9d7   : > { %v3895_v24 = vmul.f32 0.6931472, %v4522_v23 }
 0x9d9   : > { %v3896_v25 = vadd.f32 %v3895_v24, %v3883_v8 }
 0x9db   : > { %3897 = vst [vmem:[%s172_s23] sm:$0x1] %v3896_v25 }
 0x9dc   : > { %4594 = shalt.err (!%p4591_p13)
}
 0x9dd   : > { %s4595_s17 = scalar_lea.hbm %s5052_s26, 16  ;;  %s4599_s3 = scalar_lea.hbm %s5098_s2, 32 }
 0x9de   : > { %p4596_p7 = scmp.ne.s32.totalorder %s5052_s26, %s4595_s17  ;;  %p4600_p1 = scmp.lt.u32.totalorder %s5052_s26, %s5098_s2 }
 0x9df   : > { %p4601_p11 = scmp.lt.u32.totalorder %s4599_s3, %s4595_s17  ;;  %p4603_p9 = scmp.lt.u32.totalorder %s4595_s17, %s5052_s26 }
 0x9e0   : > { %p4597_p3 = pnand %p4596_p7, %p5117_p10 }
 0x9e1   : > { %p4602_p8 = por %p4601_p11, %p4600_p1 }
 0x9e2   : > { %p4598_p12 = pneg %p4597_p3 }
 0x9e3   : > { %p4604_p2 = por %p4603_p9, %p4602_p8 }
 0x9e5   : > { %p4605_p4 = pnand %p4604_p2, %p4598_p12 }
 0x9e7   : > { %4608 = shalt.err (!%p4605_p4)
}
 0x9e8   : > { %4428 = dma.vmem_to_hbm [thread:$0]  (%p5117_p10), %s5054_s28, 16, %s5052_s26, %s3899_s8  }
 0x9e9 PF: > { %s3923_s25 = sand.u32 1, %s4639_s9   ;;  %p5118_p5 = scmp.ne.s32.totalorder %s5107_s22, 0 }
 0x9ea   : > { %p5119_p0 = scmp.ge.s32.totalorder %s4651_s12, 2  ;;  %s3924_s29 = scalar_lea.sflag [#allocation4], %s3923_s25 }
 0x9ec   : > { %p4439_p6 = pnand %p5119_p0, %p5118_p5 }
 0x9ee   : > { %4634 = dma.done.wait (!%p4439_p6), %s3924_s29, 16  }
 0x9ef   : > { %4636 = vsyncadd (!%p4439_p6), %s3924_s29, 4294967280  ;;  %p16_p13 = scmp.ge.s32.totalorder %s4702_s15, 4   ;;  %s5120_s9 = smov %s4643_s10 }
 0x9f0   : > { %s5121_s10 = smov %s4647_s11  ;;  %s5122_s11 = smov %s4714_s18 }
 0x9f1   : > { %s5123_s12 = smov %s4702_s15  ;;  %18 = sbr.rel (!%p16_p13) target bundleno = 6 (0x6), region = 84 }
 0x9f8   :  { %3928 = vsyncpa [#allocation3], 1 }
 0x9f9   :  { %3930 = vsyncpa [#allocation3 + $0x1], 1 }
 0x9fa   :  { %3931 = vsyncpa [#allocation6], 1 }
 0x9fb   :  { %3932 = vsyncpa [#allocation4], 1 }
 0x9fc   :  { %3934 = vsyncpa [#allocation4 + $0x1], 1 }

</bundles_post_ra>
